<compile_context>
chip_gen: v7x
topology: tpu7x:2x2x1
jax: 0.10.0
libtpu: 0.0.40
codegen_flags: <defaults>
</compile_context>

<pallas_src>
import jax
import jax.numpy as jnp
from jax.experimental import pallas as pl
from jax.experimental.pallas import tpu as pltpu

EPS = 1e-5          # torch.nn.BatchNorm1d default eps
NEG_SLOPE = 0.01    # torch.nn.LeakyReLU default negative_slope


def _round_up(x, m):
    return ((x + m - 1) // m) * m


def _bn(x, p):
    # p: [4, F] = (gamma, beta, running_mean, running_var); eval-mode BN.
    return (x - p[2]) * jax.lax.rsqrt(p[3] + EPS) * p[0] + p[1]


def fold_bn_into_linear(params):
    """Fold the three eval-mode BatchNorms into the Linear weights/biases.

    Returns (w1f, b1f, w2f, b2f, w3_row, b3) with weights stored [in, out] and
    w3 as a (1, mlp) row for the lane-dense final contraction.
    """
    bn0, w1, b1, bn1, w2, b2, bn2, w3, b3 = params

    def scale_shift(bn):
        gamma, beta, mean, var = bn[0], bn[1], bn[2], bn[3]
        s = gamma * jax.lax.rsqrt(var + EPS)
        return s, beta - mean * s

    s0, t0 = scale_shift(bn0)   # BN on the concatenated input features
    s1, t1 = scale_shift(bn1)   # BN after Linear 1
    s2, t2 = scale_shift(bn2)   # BN after Linear 2

    w1f = (w1 * s0[:, None]) * s1[None, :]
    b1f = (t0[None, :] @ w1 + b1) * s1[None, :] + t1[None, :]
    w2f = w2 * s2[None, :]
    b2f = b2 * s2[None, :] + t2[None, :]
    w3_row = w3.T               # (1, mlp)
    return w1f, b1f, w2f, b2f, w3_row, b3


def mlp_kernel(x_ref, w1_ref, b1_ref, w2_ref, b2_ref, w3_ref, b3_ref, o_ref):
    # x: (block_b, 6*D).  Cast to the weight dtype (bf16 fast path / f32 exact).
    x = x_ref[...].astype(w1_ref.dtype)

    # Linear+BN (folded) -> LeakyReLU   (Dropout is identity in eval mode)
    h = jnp.dot(x, w1_ref[...], preferred_element_type=jnp.float32) + b1_ref[...]
    h = jnp.where(h >= 0, h, NEG_SLOPE * h)

    # Linear+BN (folded) -> LeakyReLU
    h = jnp.dot(h.astype(w2_ref.dtype), w2_ref[...],
                preferred_element_type=jnp.float32) + b2_ref[...]
    h = jnp.where(h >= 0, h, NEG_SLOPE * h)

    # Final Linear(mlp -> 1): contract the feature axis of both operands so the
    # per-row scalars land directly in the lane axis -> (1, block_b) row,
    # giving unmasked lane-dense stores instead of a (block_b, 1) masked column.
    row = jax.lax.dot_general(
        w3_ref[...], h.astype(w3_ref.dtype),
        dimension_numbers=(((1,), (1,)), ((), ())),
        preferred_element_type=jnp.float32)
    o_ref[...] = (row + b3_ref[...]).astype(o_ref.dtype)


def mlp_forward(feat, params, *, block_b=1024, use_bf16=False):
    """feat: [batch, 6*D] float32.  Returns [batch, 1] float32."""
    batch, in_dim = feat.shape
    w1f, b1f, w2f, b2f, w3r, b3 = fold_bn_into_linear(params)

    if use_bf16:
        # Halve weight/activation bytes into the MXU; accumulation stays f32 and
        # biases / LeakyReLU stay f32 (v5e VPU has no bf16 ALU).
        feat = feat.astype(jnp.bfloat16)
        w1f, w2f, w3r = (w.astype(jnp.bfloat16) for w in (w1f, w2f, w3r))

    # Tile the batch in large lane-aligned blocks; pad instead of asserting.
    block_b = max(128, min(_round_up(block_b, 128), _round_up(batch, 128)))
    # v7x has 2 TensorCores: keep >= 2 parallel grid steps when the batch allows.
    if _round_up(batch, block_b) // block_b < 2 and block_b > 128:
        block_b = max(128, _round_up((batch + 1) // 2, 128))
    padded = _round_up(batch, block_b)
    if padded != batch:
        feat = jnp.pad(feat, ((0, padded - batch), (0, 0)))
    nblk = padded // block_b

    def full(shape):
        return pl.BlockSpec(shape, lambda i: (0, 0))   # constant block: fetched once

    in_specs = [
        pl.BlockSpec((block_b, in_dim), lambda i: (i, 0)),   # activations, batch-tiled
        full(w1f.shape), full(b1f.shape),
        full(w2f.shape), full(b2f.shape),
        full(w3r.shape), full(b3.shape),
    ]
    # Lane-dense output slab: one (1, block_b) row per grid step.
    out_specs = pl.BlockSpec((1, block_b), lambda i: (0, i))

    out_row = pl.pallas_call(
        mlp_kernel,
        out_shape=jax.ShapeDtypeStruct((1, padded), jnp.float32),
        grid_spec=pltpu.PrefetchScalarGridSpec(
            num_scalar_prefetch=0,
            grid=(nblk,),
            in_specs=in_specs,
            out_specs=out_specs,
        ),
        compiler_params=pltpu.CompilerParams(dimension_semantics=("parallel",)),
    )(feat, w1f, b1f, w2f, b2f, w3r, b3)

    return out_row[0, :batch][:, None]   # (batch, 1)


def init_params(key, emb_dim, mlp_size=64):
    """Deterministic parameter init matching the module's shapes.
    Linear weights: xavier_uniform (stored transposed [in, out]); biases: PyTorch
    default U(-1/sqrt(fan_in), 1/sqrt(fan_in)).  BatchNorm: gamma=1, beta=0, and
    non-trivial running stats so the normalization math is exercised."""
    in0 = 6 * emb_dim
    ks = jax.random.split(key, 12)

    def xavier_t(k, fan_in, fan_out):
        bound = (6.0 / (fan_in + fan_out)) ** 0.5
        return jax.random.uniform(k, (fan_in, fan_out), jnp.float32, -bound, bound)

    def lin_bias(k, fan_in, fan_out):
        bound = 1.0 / (fan_in ** 0.5)
        return jax.random.uniform(k, (1, fan_out), jnp.float32, -bound, bound)

    def bn_params(k, dim):
        k1, k2 = jax.random.split(k)
        gamma = jnp.ones((dim,), jnp.float32)
        beta = jnp.zeros((dim,), jnp.float32)
        mean = 0.1 * jax.random.normal(k1, (dim,), jnp.float32)
        var = 1.0 + 0.1 * jax.random.uniform(k2, (dim,), jnp.float32)
        return jnp.stack([gamma, beta, mean, var]).astype(jnp.float32)

    bn0 = bn_params(ks[0], in0)
    w1 = xavier_t(ks[1], in0, mlp_size)
    b1 = lin_bias(ks[2], in0, mlp_size)
    bn1 = bn_params(ks[3], mlp_size)
    w2 = xavier_t(ks[4], mlp_size, mlp_size)
    b2 = lin_bias(ks[5], mlp_size, mlp_size)
    bn2 = bn_params(ks[6], mlp_size)
    w3 = xavier_t(ks[7], mlp_size, 1)
    b3 = lin_bias(ks[8], mlp_size, 1)
    return (bn0, w1, b1, bn1, w2, b2, bn2, w3, b3)


def reference_forward(feat, params):
    # Un-folded, eval-mode semantics of the PyTorch module (Dropout = identity).
    bn0, w1, b1, bn1, w2, b2, bn2, w3, b3 = params
    h = _bn(feat, bn0)
    h = h @ w1 + b1
    h = _bn(h, bn1)
    h = jnp.where(h >= 0, h, NEG_SLOPE * h)
    h = h @ w2 + b2
    h = _bn(h, bn2)
    h = jnp.where(h >= 0, h, NEG_SLOPE * h)
    return h @ w3 + b3


def reference_forward_folded(feat, params, dtype):
    # Mirrors the kernel compute path exactly (for checking the bf16 fast path).
    w1f, b1f, w2f, b2f, w3r, b3 = fold_bn_into_linear(params)
    w1f, w2f, w3r = (w.astype(dtype) for w in (w1f, w2f, w3r))
    h = jnp.dot(feat.astype(dtype), w1f, preferred_element_type=jnp.float32) + b1f
    h = jnp.where(h >= 0, h, NEG_SLOPE * h)
    h = jnp.dot(h.astype(dtype), w2f, preferred_element_type=jnp.float32) + b2f
    h = jnp.where(h >= 0, h, NEG_SLOPE * h)
    return jnp.dot(h.astype(dtype), w3r.T, preferred_element_type=jnp.float32) + b3


if __name__ == "__main__":
    key = jax.random.PRNGKey(0)
    k_emb, k_ids, k_par = jax.random.split(key, 3)

    # self.X (embs): [num_entities, 3, D]; 6*D == 2*(3*D) so the concat of the
    # two flattened embeddings matches the BatchNorm1d(6*D) input width.
    num_entities, per_entity, emb_dim = 10, 3, 16
    batch, mlp_size = 300, 64        # non-multiple of the tile: exercises padding

    X = jax.random.normal(k_emb, (num_entities, per_entity, emb_dim), jnp.float32)
    ids = jax.random.randint(k_ids, (batch, 2), 0, num_entities, jnp.int32)
    params = init_params(k_par, emb_dim, mlp_size)

    # Gather + reshape + concat glue (forward() preamble), then the fused MLP.
    X_u = X[ids[:, 0]].reshape(batch, -1)
    X_i = X[ids[:, 1]].reshape(batch, -1)
    feat = jnp.concatenate([X_u, X_i], axis=-1)   # [batch, 6*D]

    ref = reference_forward(feat, params)

    # f32 path: exact module (eval) semantics with BN folded at trace time.
    out = jax.block_until_ready(mlp_forward(feat, params))
    assert out.shape == (batch, 1), out.shape
    assert jnp.allclose(out, ref, atol=1e-4, rtol=1e-4)

    # bf16-weight fast path: checked against a reference that applies the same casts.
    out_bf16 = jax.block_until_ready(mlp_forward(feat, params, use_bf16=True))
    ref_bf16 = reference_forward_folded(feat, params, jnp.bfloat16)
    assert out_bf16.shape == (batch, 1), out_bf16.shape
    assert jnp.allclose(out_bf16, ref_bf16, atol=2e-3, rtol=2e-3)

    print("KERNEL_OK")
</pallas_src>

<mosaic_0001>
module attributes {stable_mosaic.version = 11 : i64} {
  func.func @mlp_kernel(%arg0: i32, %arg1: memref<256x96xf32, #tpu.memory_space<vmem>>, %arg2: memref<96x64xf32, #tpu.memory_space<vmem>>, %arg3: memref<1x64xf32, #tpu.memory_space<vmem>>, %arg4: memref<64x64xf32, #tpu.memory_space<vmem>>, %arg5: memref<1x64xf32, #tpu.memory_space<vmem>>, %arg6: memref<1x64xf32, #tpu.memory_space<vmem>>, %arg7: memref<1x1xf32, #tpu.memory_space<vmem>>, %arg8: memref<1x256xf32, #tpu.memory_space<vmem>>) attributes {dimension_semantics = [#tpu.dimension_semantics<parallel>], iteration_bounds = array<i64: 2>, scalar_prefetch = 0 : i64, scratch_operands = 0 : i64, tpu.core_type = #tpu.core_type<tc>, window_params = [{transform_indices = @transform_0, window_bounds = array<i64: 256, 96>}, {pipeline_mode = #tpu.pipeline_mode<synchronous>, transform_indices = @transform_1, window_bounds = array<i64: 96, 64>}, {pipeline_mode = #tpu.pipeline_mode<synchronous>, transform_indices = @transform_2, window_bounds = array<i64: 1, 64>}, {pipeline_mode = #tpu.pipeline_mode<synchronous>, transform_indices = @transform_3, window_bounds = array<i64: 64, 64>}, {pipeline_mode = #tpu.pipeline_mode<synchronous>, transform_indices = @transform_4, window_bounds = array<i64: 1, 64>}, {pipeline_mode = #tpu.pipeline_mode<synchronous>, transform_indices = @transform_5, window_bounds = array<i64: 1, 64>}, {pipeline_mode = #tpu.pipeline_mode<synchronous>, transform_indices = @transform_6, window_bounds = array<i64: 1, 1>}, {transform_indices = @transform_7, window_bounds = array<i64: 1, 256>}]} {
    %c0 = arith.constant 0 : index
    %c0_0 = arith.constant 0 : index
    %0 = vector.load %arg1[%c0, %c0_0] : memref<256x96xf32, #tpu.memory_space<vmem>>, vector<256x96xf32>
    %c0_1 = arith.constant 0 : index
    %c0_2 = arith.constant 0 : index
    %1 = vector.load %arg2[%c0_1, %c0_2] : memref<96x64xf32, #tpu.memory_space<vmem>>, vector<96x64xf32>
    %cst = arith.constant dense<0.000000e+00> : vector<256x64xf32>
    %2 = tpu.matmul %0, %1, %cst {dimension_numbers = #tpu.dot_dimension_numbers<[1], [0], [0], [1], [0, 0, 1, 1], [], []>} : vector<256x96xf32>, vector<96x64xf32>, vector<256x64xf32> -> vector<256x64xf32>
    %c0_3 = arith.constant 0 : index
    %c0_4 = arith.constant 0 : index
    %3 = vector.load %arg3[%c0_3, %c0_4] : memref<1x64xf32, #tpu.memory_space<vmem>>, vector<1x64xf32>
    %4 = vector.broadcast %3 : vector<1x64xf32> to vector<256x64xf32>
    %5 = arith.addf %2, %4 : vector<256x64xf32>
    %cst_5 = arith.constant 0.000000e+00 : f32
    %6 = vector.broadcast %cst_5 : f32 to vector<256x64xf32>
    %7 = arith.cmpf oge, %5, %6 : vector<256x64xf32>
    %cst_6 = arith.constant 0.00999999977 : f32
    %8 = vector.broadcast %cst_6 : f32 to vector<256x64xf32>
    %9 = arith.mulf %8, %5 : vector<256x64xf32>
    %10 = arith.select %7, %5, %9 : vector<256x64xi1>, vector<256x64xf32>
    %c0_7 = arith.constant 0 : index
    %c0_8 = arith.constant 0 : index
    %11 = vector.load %arg4[%c0_7, %c0_8] : memref<64x64xf32, #tpu.memory_space<vmem>>, vector<64x64xf32>
    %cst_9 = arith.constant dense<0.000000e+00> : vector<256x64xf32>
    %12 = tpu.matmul %10, %11, %cst_9 {dimension_numbers = #tpu.dot_dimension_numbers<[1], [0], [0], [1], [0, 0, 1, 1], [], []>} : vector<256x64xf32>, vector<64x64xf32>, vector<256x64xf32> -> vector<256x64xf32>
    %c0_10 = arith.constant 0 : index
    %c0_11 = arith.constant 0 : index
    %13 = vector.load %arg5[%c0_10, %c0_11] : memref<1x64xf32, #tpu.memory_space<vmem>>, vector<1x64xf32>
    %14 = vector.broadcast %13 : vector<1x64xf32> to vector<256x64xf32>
    %15 = arith.addf %12, %14 : vector<256x64xf32>
    %cst_12 = arith.constant 0.000000e+00 : f32
    %16 = vector.broadcast %cst_12 : f32 to vector<256x64xf32>
    %17 = arith.cmpf oge, %15, %16 : vector<256x64xf32>
    %cst_13 = arith.constant 0.00999999977 : f32
    %18 = vector.broadcast %cst_13 : f32 to vector<256x64xf32>
    %19 = arith.mulf %18, %15 : vector<256x64xf32>
    %20 = arith.select %17, %15, %19 : vector<256x64xi1>, vector<256x64xf32>
    %c0_14 = arith.constant 0 : index
    %c0_15 = arith.constant 0 : index
    %21 = vector.load %arg6[%c0_14, %c0_15] : memref<1x64xf32, #tpu.memory_space<vmem>>, vector<1x64xf32>
    %cst_16 = arith.constant dense<0.000000e+00> : vector<1x256xf32>
    %22 = tpu.matmul %21, %20, %cst_16 {dimension_numbers = #tpu.dot_dimension_numbers<[1], [1], [0], [0], [0, 0, 1, 0], [], []>} : vector<1x64xf32>, vector<256x64xf32>, vector<1x256xf32> -> vector<1x256xf32>
    %c0_17 = arith.constant 0 : index
    %c0_18 = arith.constant 0 : index
    %23 = vector.load %arg7[%c0_17, %c0_18] : memref<1x1xf32, #tpu.memory_space<vmem>>, vector<1x1xf32>
    %24 = vector.broadcast %23 : vector<1x1xf32> to vector<1x256xf32>
    %25 = arith.addf %22, %24 : vector<1x256xf32>
    %c0_19 = arith.constant 0 : index
    %c0_20 = arith.constant 0 : index
    %26 = vector.load %arg8[%c0_19, %c0_20] : memref<1x256xf32, #tpu.memory_space<vmem>>, vector<1x256xf32>
    tpu.vector_store %arg8[%c0_19, %c0_20], %25 {strides = array<i32>} : memref<1x256xf32, #tpu.memory_space<vmem>>, vector<1x256xf32>,
    return
  }
  func.func @transform_0(%arg0: i32) -> (i32, i32) {
    %c0_i32 = arith.constant 0 : i32
    %c0_i32_0 = arith.constant 0 : i32
    return %arg0, %c0_i32 : i32, i32
  }
  func.func @transform_1(%arg0: i32) -> (i32, i32) {
    %c0_i32 = arith.constant 0 : i32
    %c0_i32_0 = arith.constant 0 : i32
    %c0_i32_1 = arith.constant 0 : i32
    return %c0_i32, %c0_i32_0 : i32, i32
  }
  func.func @transform_2(%arg0: i32) -> (i32, i32) {
    %c0_i32 = arith.constant 0 : i32
    %c0_i32_0 = arith.constant 0 : i32
    %c0_i32_1 = arith.constant 0 : i32
    return %c0_i32, %c0_i32_0 : i32, i32
  }
  func.func @transform_3(%arg0: i32) -> (i32, i32) {
    %c0_i32 = arith.constant 0 : i32
    %c0_i32_0 = arith.constant 0 : i32
    %c0_i32_1 = arith.constant 0 : i32
    return %c0_i32, %c0_i32_0 : i32, i32
  }
  func.func @transform_4(%arg0: i32) -> (i32, i32) {
    %c0_i32 = arith.constant 0 : i32
    %c0_i32_0 = arith.constant 0 : i32
    %c0_i32_1 = arith.constant 0 : i32
    return %c0_i32, %c0_i32_0 : i32, i32
  }
  func.func @transform_5(%arg0: i32) -> (i32, i32) {
    %c0_i32 = arith.constant 0 : i32
    %c0_i32_0 = arith.constant 0 : i32
    %c0_i32_1 = arith.constant 0 : i32
    return %c0_i32, %c0_i32_0 : i32, i32
  }
  func.func @transform_6(%arg0: i32) -> (i32, i32) {
    %c0_i32 = arith.constant 0 : i32
    %c0_i32_0 = arith.constant 0 : i32
    %c0_i32_1 = arith.constant 0 : i32
    return %c0_i32, %c0_i32_0 : i32, i32
  }
  func.func @transform_7(%arg0: i32) -> (i32, i32) {
    %c0_i32 = arith.constant 0 : i32
    %c0_i32_0 = arith.constant 0 : i32
    return %c0_i32, %arg0 : i32, i32
  }
}

</mosaic_0001>

<bundles_post_ra>
// kernel: tpu_custom_call.1
= control target key start
LH: loop header
LB: loop body
LE: loop exit
PB: predicated region body
PF: predicated region fallthrough
CT: control target
= control target key end

     0   :  { %s2518_s0 = inlined_call_operand.vmem [shape: f32[512,96], index: 0, kind: input, shape index: {}]   ;;  %s2519_s1 = inlined_call_operand.vmem [shape: f32[96,64], index: 1, kind: input, shape index: {}]   ;;  %s2520_s2 = inlined_call_operand.vmem [shape: f32[1,64], index: 2, kind: input, shape index: {}]   ;;  %s2521_s3 = inlined_call_operand.vmem [shape: f32[64,64], index: 3, kind: input, shape index: {}]   ;;  %s2522_s4 = inlined_call_operand.vmem [shape: f32[1,64], index: 4, kind: input, shape index: {}]   ;;  %s2523_s5 = inlined_call_operand.vmem [shape: f32[1,64], index: 5, kind: input, shape index: {}]   ;;  %s2524_s6 = inlined_call_operand.<no memory space> [shape: f32[1,1], index: 6, kind: input, shape index: {}]   ;;  %s2525_s7 = inlined_call_operand.hbm [shape: f32[1,512], index: 7, kind: output, shape index: {}]  }
   0x1   :  { %v12_v0 = vstv %s2524_s6 }
   0x2   :  { %13 = vst [vmem:[#allocation2] sm:$0x1] %v12_v0 }
   0x3   :  { %14 = vsyncpa [#allocation4], 0 }
   0x4   :  { %16 = vsyncpa [#allocation4 + $0x1], 0  ;;  %s2068_s26 = smov 0   ;;  %s2070_s27 = smov 0  }
   0x5   :  { %s2072_s28 = smov 0   ;;  %s2074_s29 = smov 0  }
   0x6 LB: > { %s1461_s6 = sadd.s32 4294967295, %s2020_s29   ;;  %s1462_s30 = sadd.s32 4294967294, %s2020_s29   ;;  %s2020_s29 = sphi %s2074_s29, %s2533_s29   ;;  %s2016_s28 = sphi %s2072_s28, %s2532_s28   ;;  %s2012_s27 = sphi %s2070_s27, %s2531_s27   ;;  %s2008_s26 = sphi %s2068_s26, %s2530_s26  }
   0x7   : > { %s2091_s8 = sadd.s32 1, %s2020_s29   ;;  %s181_s9 = sadd.s32 1, %s2016_s28 }
   0x8   : > { %s178_s10 = ssub.s32 %s2020_s29, %s2091_s8  ;;  %p191_p0 = scmp.ne.s32.totalorder %s2016_s28, %s2012_s27 }
   0x9   : > { %p179_p1 = scmp.eq.s32.totalorder %s178_s10, 0  ;;  %p192_p2 = scmp.eq.s32.totalorder %s1461_s6, 1 }
   0xa   : > { %p197_p3 = scmp.ne.s32.totalorder %s2012_s27, %s2008_s26  ;;  %p198_p4 = scmp.eq.s32.totalorder %s1462_s30, 1 }
   0xb   : > { %s2101_s11 = scalar_select %p179_p1, %s2016_s28, %s181_s9  }
   0xc   : > { %p2103_p5 = por %p192_p2, %p191_p0  ;;  %p2107_p6 = por %p198_p4, %p197_p3 }
   0xd   : > { %p1465_p7 = scmp.ge.s32.totalorder %s2020_s29, 1  ;;  %p243_p8 = scmp.lt.s32.totalorder %s2020_s29, 3 }
   0xf   : > { %p244_p9 = pnand %p1465_p7, %p243_p8 }
  0x10   : > { %v314_v1 = vld [vmem:[%s2519_s1] sm:$0xff] (!%p244_p9)  ;;  %v315_v2 = vld [vmem:[%s2519_s1 + $0x8] sm:$0xff] (!%p244_p9)  ;;  %v316_v3 = vld [vmem:[%s2519_s1 + $0x10] sm:$0xff] (!%p244_p9)  ;;  %s2122_s20 = sshll.u32 (!%p244_p9), %s1461_s6, 5  ;;  %vm333_vm0 = vcmask (!%p244_p9), 785408   ;;  %vm766_vm3 = vcmask (!%p244_p9), 523264  }
  0x11   : > { %247 = sbr.rel (%p244_p9) target bundleno = 813 (0x32d), region = 48  ;;  %v1828_v4 = vpack.c.bf16 (!%p244_p9), %v315_v2, %v314_v1  ;;  %v317_v5 = vld [vmem:[%s2519_s1 + $0x18] sm:$0xff] (!%p244_p9)  ;;  %p276_p10 = scmp.lt.s32.totalorder (!%p244_p9), %s2122_s20, 63  ;;  %v318_v7 = vld [vmem:[%s2519_s1 + $0x20] sm:$0xff] (!%p244_p9)  ;;  %v319_v8 = vld [vmem:[%s2519_s1 + $0x28] sm:$0xff] (!%p244_p9) }
  0x12   : > { %v1832_v6 = vpack.c.bf16 (!%p244_p9), %v317_v5, %v316_v3  ;;  %v751_v9 = vld [vmem:[%s2521_s3] sm:$0xff] (!%p244_p9)  ;;  %v752_v10 = vld [vmem:[%s2521_s3 + $0x8] sm:$0xff] (!%p244_p9)  ;;  %v753_v11 = vld [vmem:[%s2521_s3 + $0x10] sm:$0xff] (!%p244_p9)  ;;  %v1836_v12 = vpack.c.bf16 (!%p244_p9), %v319_v8, %v318_v7  ;;  %s272_s21 = sand.u32 (!%p244_p9), 1, %s2012_s27   ;;  %s2476_s9 = scalar_lea.hbm (!%p244_p9), %s2525_s7, %s2122_s20 }
  0x13   : > { %1829 = vmatprep.subr.bf16.mxu0 (!%p244_p9), %v1828_v4  ;;  %v1852_v13 = vpack.c.bf16 (!%p244_p9), %v752_v10, %v751_v9  ;;  %v754_v14 = vld [vmem:[%s2521_s3 + $0x18] sm:$0xff] (!%p244_p9)  ;;  %v320_v15 = vld [vmem:[%s2519_s1 + $0x30] sm:$0xff] (!%p244_p9)  ;;  %v322_v20 = vld [vmem:[%s2519_s1 + $0x40] sm:$0xff] (!%p244_p9)  ;;  %s1466_s22 = sshll.u32 (!%p244_p9), %s272_s21, 1 }
  0x14   : > { %1831 = vmatpush3.bf16.msra.mxu0 (!%p244_p9), %v1828_v4  ;;  %v321_v16 = vld [vmem:[%s2519_s1 + $0x38] sm:$0xff] (!%p244_p9)  ;;  %v1856_v17 = vpack.c.bf16 (!%p244_p9), %v754_v14, %v753_v11  ;;  %v323_v21 = vld [vmem:[%s2519_s1 + $0x48] sm:$0xff] (!%p244_p9)  ;;  %v324_v23 = vld [vmem:[%s2519_s1 + $0x50] sm:$0xff] (!%p244_p9)  ;;  %s274_s23 = scalar_lea.vmem (!%p244_p9), [#allocation3], %s1466_s22 }
  0x15   : > { %1833 = vmatprep.subr.bf16.mxu0 (!%p244_p9), %v1832_v6  ;;  %1853 = vmatprep.subr.bf16.mxu1 (!%p244_p9), %v1852_v13  ;;  %v1840_v19 = vpack.c.bf16 (!%p244_p9), %v321_v16, %v320_v15  ;;  %v1844_v22 = vpack.c.bf16 (!%p244_p9), %v323_v21, %v322_v20  ;;  %v325_v24 = vld [vmem:[%s2519_s1 + $0x58] sm:$0xff] (!%p244_p9)  ;;  %v755_v57 = vld [vmem:[%s2521_s3 + $0x20] sm:$0xff] (!%p244_p9)  ;;  %v756_v58 = vld [vmem:[%s2521_s3 + $0x28] sm:$0xff] (!%p244_p9)  ;;  %s1403_s24 = sshll.u32 (!%p244_p9), %s274_s23, 4  ;;  %s2478_s24 = int_to_ptr.vmem [resolvable:$true] %s1403_s24 }
  0x16   : > { %1855 = vmatpush3.bf16.msra.mxu1 (!%p244_p9), %v1852_v13  ;;  %v1848_v25 = vpack.c.bf16 (!%p244_p9), %v325_v24, %v324_v23  ;;  %v1860_v59 = vpack.c.bf16 (!%p244_p9), %v756_v58, %v755_v57  ;;  %v757_v60 = vld [vmem:[%s2521_s3 + $0x30] sm:$0xff] (!%p244_p9)  ;;  %v758_v61 = vld [vmem:[%s2521_s3 + $0x38] sm:$0xff] (!%p244_p9)  ;;  %v2249_v63 = vld [vmem:[%s2520_s2] ss:$0 sm:$0xff] (!%p244_p9)  ;;  %s1958_s14 = scalar_lea.vmem (!%p244_p9), %s2478_s24, 32 }
  0x17   : > { %1857 = vmatprep.subr.bf16.mxu1 (!%p244_p9), %v1856_v17  ;;  %v1864_v62 = vpack.c.bf16 (!%p244_p9), %v758_v61, %v757_v60  ;;  %p1959_p11 = scmp.ne.s32.totalorder (!%p244_p9), %s2478_s24, %s1958_s14 }
  0x18   : > { %s277_s6 = scalar_select %p276_p10, %s2122_s20, 63  ;;  %1835 = vmatpush3.bf16.msra.mxu0 %v1832_v6 }
  0x19   : > { %1837 = vmatprep.subr.bf16.mxu0 %v1836_v12  ;;  %p1960_p12 = pnand %p1959_p11, %p2103_p5 }
  0x1a   : > { %s1468_s18 = sshll.u32 %s277_s6, 3  ;;  %1859 = vmatpush3.bf16.msra.mxu1 %v1856_v17  ;;  %s1389_s6 = scalar_lea.sflag [#allocation4], %s272_s21 }
  0x1b   : > { %s2156_s10 = scalar_lea.vmem %s2518_s0, %s1468_s18  ;;  %1861 = vmatprep.subr.bf16.mxu1 %v1860_v59  ;;  %p1961_p13 = pneg %p1960_p12 }
  0x1c   : > { %v282_v18 = vld [vmem:[%s2156_s10] sm:$0xff]  ;;  %1839 = vmatpush3.bf16.msra.mxu0 %v1836_v12  ;;  %v283_v26 = vld [vmem:[%s2156_s10 + $0x8] sm:$0xff]  ;;  %v284_v27 = vld [vmem:[%s2156_s10 + $0x10] sm:$0xff] }
  0x1d   : > { %1716 = vmatprep.mubr.msk.f32.mxu0 %vm333_vm0, %v282_v18  ;;  %1841 = vmatprep.subr.bf16.mxu0 %v1840_v19  ;;  %v285_v28 = vld [vmem:[%s2156_s10 + $0x18] sm:$0xff]  ;;  %v286_v29 = vld [vmem:[%s2156_s10 + $0x20] sm:$0xff]  ;;  %v287_v30 = vld [vmem:[%s2156_s10 + $0x28] sm:$0xff] }
  0x1e   : > { %v288_v31 = vld [vmem:[%s2156_s10 + $0x30] sm:$0xff]  ;;  %v289_v32 = vld [vmem:[%s2156_s10 + $0x38] sm:$0xff]  ;;  %v290_v33 = vld [vmem:[%s2156_s10 + $0x40] sm:$0xff]  ;;  %1863 = vmatpush3.bf16.msra.mxu1 %v1860_v59 }
  0x1f   : > { %v291_v34 = vld [vmem:[%s2156_s10 + $0x48] sm:$0xff]  ;;  %v292_v35 = vld [vmem:[%s2156_s10 + $0x50] sm:$0xff]  ;;  %v293_v36 = vld [vmem:[%s2156_s10 + $0x58] sm:$0xff]  ;;  %1865 = vmatprep.subr.bf16.mxu1 %v1864_v62 }
  0x20   : > { %1843 = vmatpush3.bf16.msra.mxu0 %v1840_v19  ;;  %v294_v37 = vld [vmem:[%s2156_s10 + $0x60] sm:$0xff]  ;;  %v295_v38 = vld [vmem:[%s2156_s10 + $0x68] sm:$0xff]  ;;  %v296_v39 = vld [vmem:[%s2156_s10 + $0x70] sm:$0xff] }
  0x21   : > { %1845 = vmatprep.subr.bf16.mxu0 %v1844_v22  ;;  %v297_v40 = vld [vmem:[%s2156_s10 + $0x78] sm:$0xff]  ;;  %v298_v41 = vld [vmem:[%s2156_s10 + $0x80] sm:$0xff]  ;;  %v299_v42 = vld [vmem:[%s2156_s10 + $0x88] sm:$0xff] }
  0x22   : > { %v300_v43 = vld [vmem:[%s2156_s10 + $0x90] sm:$0xff]  ;;  %v301_v44 = vld [vmem:[%s2156_s10 + $0x98] sm:$0xff]  ;;  %v302_v45 = vld [vmem:[%s2156_s10 + $0xa0] sm:$0xff]  ;;  %1867 = vmatpush3.bf16.msra.mxu1 %v1864_v62 }
  0x23   : > { %v303_v46 = vld [vmem:[%s2156_s10 + $0xa8] sm:$0xff]  ;;  %v304_v47 = vld [vmem:[%s2156_s10 + $0xb0] sm:$0xff]  ;;  %v305_v48 = vld [vmem:[%s2156_s10 + $0xb8] sm:$0xff] }
  0x24   : > { %1847 = vmatpush3.bf16.msra.mxu0 %v1844_v22  ;;  %v306_v49 = vld [vmem:[%s2156_s10 + $0xc0] sm:$0xff]  ;;  %v307_v50 = vld [vmem:[%s2156_s10 + $0xc8] sm:$0xff]  ;;  %v308_v51 = vld [vmem:[%s2156_s10 + $0xd0] sm:$0xff] }
  0x25   : > { %1849 = vmatprep.subr.bf16.mxu0 %v1848_v25  ;;  %v309_v52 = vld [vmem:[%s2156_s10 + $0xd8] sm:$0xff]  ;;  %v310_v53 = vld [vmem:[%s2156_s10 + $0xe0] sm:$0xff]  ;;  %v311_v54 = vld [vmem:[%s2156_s10 + $0xe8] sm:$0xff] }
  0x26   : > { %v312_v55 = vld [vmem:[%s2156_s10 + $0xf0] sm:$0xff]  ;;  %v313_v56 = vld [vmem:[%s2156_s10 + $0xf8] sm:$0xff]  ;;  %s2024_s10 = smov [#allocation3]  }
  0x27   : > { %s1962_s15 = sshll.u32 %s2024_s10, 4  ;;  %s1963_s15 = int_to_ptr.vmem [resolvable:$false] %s1962_s15 }
  0x28   : > { %1851 = vmatpush3.bf16.msra.mxu0 %v1848_v25  ;;  %s1964_s16 = scalar_lea.vmem %s1963_s15, 64  ;;  %p1965_p0 = scmp.lt.s32.totalorder %s2478_s24, %s1963_s15 }
  0x29   : > { %p1966_p1 = scmp.lt.s32.totalorder %s1964_s16, %s1958_s14 }
  0x2b   : > { %1717 = vmatmul.mubr.msk.f32.vlgmr.msra.gmra.mrb[0].mxu0 %vm333_vm0, %v283_v26  ;;  %p1967_p2 = por %p1966_p1, %p1965_p0 }
  0x2c   : > { %1719 = vmatprep.mubr.msk.f32.mxu0 %vm333_vm0, %v284_v27 }
  0x2d   : > { %p1968_p3 = pnand %p1967_p2, %p1961_p13 }
  0x2f   : > { %1720 = vmatmul.mubr.msk.f32.gmra.mrb[2].mxu0 %vm333_vm0, %v285_v28 }
  0x30   : > { %1722 = vmatprep.mubr.msk.f32.mxu0 %vm333_vm0, %v286_v29 }
  0x33   : > { %1723 = vmatmul.mubr.msk.f32.gmra.mrb[4].mxu0 %vm333_vm0, %v287_v30 }
  0x34   : > { %1725 = vmatprep.mubr.msk.f32.mxu0 %vm333_vm0, %v288_v31 }
  0x37   : > { %1726 = vmatmul.mubr.msk.f32.gmra.mrb[6].mxu0 %vm333_vm0, %v289_v32 }
  0x38   : > { %1728 = vmatprep.mubr.msk.f32.mxu0 %vm333_vm0, %v290_v33 }
  0x3b   : > { %1729 = vmatmul.mubr.msk.f32.gmra.mrb[8].mxu0 %vm333_vm0, %v291_v34 }
  0x3c   : > { %1731 = vmatprep.mubr.msk.f32.mxu0 %vm333_vm0, %v292_v35 }
  0x3f   : > { %1732 = vmatmul.mubr.msk.f32.gmra.mrb[10].mxu0 %vm333_vm0, %v293_v36 }
  0x40   : > { %1734 = vmatprep.mubr.msk.f32.mxu0 %vm333_vm0, %v294_v37 }
  0x43   : > { %1735 = vmatmul.mubr.msk.f32.gmra.mrb[12].mxu0 %vm333_vm0, %v295_v38 }
  0x44   : > { %1737 = vmatprep.mubr.msk.f32.mxu0 %vm333_vm0, %v296_v39 }
  0x47   : > { %1738 = vmatmul.mubr.msk.f32.gmra.mrb[14].mxu0 %vm333_vm0, %v297_v40 }
  0x48   : > { %1740 = vmatprep.mubr.msk.f32.mxu0 %vm333_vm0, %v298_v41 }
  0x4b   : > { %1741 = vmatmul.mubr.msk.f32.gmra.mrb[16].mxu0 %vm333_vm0, %v299_v42 }
  0x4c   : > { %1743 = vmatprep.mubr.msk.f32.mxu0 %vm333_vm0, %v300_v43 }
  0x4f   : > { %1744 = vmatmul.mubr.msk.f32.gmra.mrb[18].mxu0 %vm333_vm0, %v301_v44 }
  0x50   : > { %1746 = vmatprep.mubr.msk.f32.mxu0 %vm333_vm0, %v302_v45 }
  0x53   : > { %1747 = vmatmul.mubr.msk.f32.gmra.mrb[20].mxu0 %vm333_vm0, %v303_v46 }
  0x54   : > { %1749 = vmatprep.mubr.msk.f32.mxu0 %vm333_vm0, %v304_v47 }
  0x57   : > { %1750 = vmatmul.mubr.msk.f32.gmra.mrb[22].mxu0 %vm333_vm0, %v305_v48 }
  0x58   : > { %1752 = vmatprep.mubr.msk.f32.mxu0 %vm333_vm0, %v306_v49 }
  0x5b   : > { %1753 = vmatmul.mubr.msk.f32.gmra.mrb[24].mxu0 %vm333_vm0, %v307_v50 }
  0x5c   : > { %1755 = vmatprep.mubr.msk.f32.mxu0 %vm333_vm0, %v308_v51 }
  0x5f   : > { %1756 = vmatmul.mubr.msk.f32.gmra.mrb[26].mxu0 %vm333_vm0, %v309_v52 }
  0x60   : > { %1758 = vmatprep.mubr.msk.f32.mxu0 %vm333_vm0, %v310_v53 }
  0x63   : > { %1759 = vmatmul.mubr.msk.f32.gmra.mrb[28].mxu0 %vm333_vm0, %v311_v54 }
  0x64   : > { %1761 = vmatprep.mubr.msk.f32.mxu0 %vm333_vm0, %v312_v55 }
  0x67   : > { %1762 = vmatmul.mubr.msk.f32.gmra.mrb[30].mxu0 %vm333_vm0, %v313_v56 }
  0xfe   : > { %v1718_v0 = vpop.f32.mrb[0].mxu0 }
  0xff   : > { %v502_v1 = vadd.f32 %v1718_v0, %v2249_v63  ;;  %v496_v2 = vpop.f32.mrb[1].mxu0 }
 0x100   : > { %v497_v3 = vadd.f32 %v2249_v63, %v496_v2 }
 0x101   : > { %v688_v4 = vmul.f32 0.01, %v502_v1  ;;  %vm656_vm1 = vcmp.ge.f32.partialorder %v502_v1, 0.0 }
 0x102   : > { %v1721_v5 = vpop.f32.mrb[2].mxu0  ;;  %vm655_vm2 = vcmp.ge.f32.partialorder %v497_v3, 0.0  ;;  %v687_v6 = vmul.f32 0.01, %v497_v3 }
 0x103   : > { %v512_v7 = vadd.f32 %v1721_v5, %v2249_v63  ;;  %v506_v8 = vpop.f32.mrb[3].mxu0  ;;  %v720_v12 = vsel %vm656_vm1, %v502_v1, %v688_v4 }
 0x104   : > { %v507_v9 = vadd.f32 %v2249_v63, %v506_v8  ;;  %v719_v10 = vsel %vm655_vm2, %v497_v3, %v687_v6 }
 0x105   : > { %v690_v11 = vmul.f32 0.01, %v512_v7  ;;  %1780 = vmatprep.mubr.msk.f32.mxu1 %vm766_vm3, %v719_v10  ;;  %vm658_vm4 = vcmp.ge.f32.partialorder %v512_v7, 0.0 }
 0x106   : > { %vm657_vm5 = vcmp.ge.f32.partialorder %v507_v9, 0.0  ;;  %v689_v13 = vmul.f32 0.01, %v507_v9  ;;  %v1724_v14 = vpop.f32.mrb[4].mxu0  ;;  %1781 = vmatmul.mubr.msk.f32.vlgmr.msra.gmra.mrb[0].mxu1 %vm766_vm3, %v720_v12 }
 0x107   : > { %v522_v15 = vadd.f32 %v1724_v14, %v2249_v63  ;;  %v516_v16 = vpop.f32.mrb[5].mxu0  ;;  %v722_v20 = vsel %vm658_vm4, %v512_v7, %v690_v11 }
 0x108   : > { %v517_v17 = vadd.f32 %v2249_v63, %v516_v16  ;;  %v721_v18 = vsel %vm657_vm5, %v507_v9, %v689_v13 }
 0x109   : > { %v692_v19 = vmul.f32 0.01, %v522_v15  ;;  %1783 = vmatprep.mubr.msk.f32.mxu1 %vm766_vm3, %v721_v18  ;;  %vm660_vm6 = vcmp.ge.f32.partialorder %v522_v15, 0.0 }
 0x10a   : > { %vm659_vm7 = vcmp.ge.f32.partialorder %v517_v17, 0.0  ;;  %v691_v21 = vmul.f32 0.01, %v517_v17  ;;  %v1727_v22 = vpop.f32.mrb[6].mxu0  ;;  %1784 = vmatmul.mubr.msk.f32.gmra.mrb[2].mxu1 %vm766_vm3, %v722_v20 }
 0x10b   : > { %v532_v23 = vadd.f32 %v1727_v22, %v2249_v63  ;;  %v526_v24 = vpop.f32.mrb[7].mxu0  ;;  %v724_v28 = vsel %vm660_vm6, %v522_v15, %v692_v19 }
 0x10c   : > { %v527_v25 = vadd.f32 %v2249_v63, %v526_v24  ;;  %v723_v26 = vsel %vm659_vm7, %v517_v17, %v691_v21 }
 0x10d   : > { %v694_v27 = vmul.f32 0.01, %v532_v23  ;;  %1786 = vmatprep.mubr.msk.f32.mxu1 %vm766_vm3, %v723_v26  ;;  %vm662_vm8 = vcmp.ge.f32.partialorder %v532_v23, 0.0 }
 0x10e   : > { %vm661_vm9 = vcmp.ge.f32.partialorder %v527_v25, 0.0  ;;  %v693_v29 = vmul.f32 0.01, %v527_v25  ;;  %v1730_v30 = vpop.f32.mrb[8].mxu0  ;;  %1787 = vmatmul.mubr.msk.f32.gmra.mrb[4].mxu1 %vm766_vm3, %v724_v28 }
 0x10f   : > { %v542_v31 = vadd.f32 %v1730_v30, %v2249_v63  ;;  %v536_v32 = vpop.f32.mrb[9].mxu0  ;;  %v726_v36 = vsel %vm662_vm8, %v532_v23, %v694_v27 }
 0x110   : > { %v537_v33 = vadd.f32 %v2249_v63, %v536_v32  ;;  %v725_v34 = vsel %vm661_vm9, %v527_v25, %v693_v29 }
 0x111   : > { %v696_v35 = vmul.f32 0.01, %v542_v31  ;;  %1789 = vmatprep.mubr.msk.f32.mxu1 %vm766_vm3, %v725_v34  ;;  %vm664_vm10 = vcmp.ge.f32.partialorder %v542_v31, 0.0 }
 0x112   : > { %vm663_vm11 = vcmp.ge.f32.partialorder %v537_v33, 0.0  ;;  %v695_v37 = vmul.f32 0.01, %v537_v33  ;;  %v1733_v38 = vpop.f32.mrb[10].mxu0  ;;  %1790 = vmatmul.mubr.msk.f32.gmra.mrb[6].mxu1 %vm766_vm3, %v726_v36 }
 0x113   : > { %v552_v39 = vadd.f32 %v1733_v38, %v2249_v63  ;;  %v546_v40 = vpop.f32.mrb[11].mxu0  ;;  %v728_v44 = vsel %vm664_vm10, %v542_v31, %v696_v35 }
 0x114   : > { %v547_v41 = vadd.f32 %v2249_v63, %v546_v40  ;;  %v727_v42 = vsel %vm663_vm11, %v537_v33, %v695_v37 }
 0x115   : > { %v698_v43 = vmul.f32 0.01, %v552_v39  ;;  %1792 = vmatprep.mubr.msk.f32.mxu1 %vm766_vm3, %v727_v42  ;;  %vm666_vm12 = vcmp.ge.f32.partialorder %v552_v39, 0.0 }
 0x116   : > { %vm665_vm13 = vcmp.ge.f32.partialorder %v547_v41, 0.0  ;;  %v697_v45 = vmul.f32 0.01, %v547_v41  ;;  %v1736_v46 = vpop.f32.mrb[12].mxu0  ;;  %1793 = vmatmul.mubr.msk.f32.gmra.mrb[8].mxu1 %vm766_vm3, %v728_v44 }
 0x117   : > { %v562_v47 = vadd.f32 %v1736_v46, %v2249_v63  ;;  %v556_v48 = vpop.f32.mrb[13].mxu0  ;;  %v730_v52 = vsel %vm666_vm12, %v552_v39, %v698_v43 }
 0x118   : > { %v557_v49 = vadd.f32 %v2249_v63, %v556_v48  ;;  %v729_v50 = vsel %vm665_vm13, %v547_v41, %v697_v45 }
 0x119   : > { %v700_v51 = vmul.f32 0.01, %v562_v47  ;;  %1795 = vmatprep.mubr.msk.f32.mxu1 %vm766_vm3, %v729_v50  ;;  %vm668_vm14 = vcmp.ge.f32.partialorder %v562_v47, 0.0 }
 0x11a   : > { %vm667_vm15 = vcmp.ge.f32.partialorder %v557_v49, 0.0  ;;  %v699_v53 = vmul.f32 0.01, %v557_v49  ;;  %v1739_v54 = vpop.f32.mrb[14].mxu0  ;;  %1796 = vmatmul.mubr.msk.f32.gmra.mrb[10].mxu1 %vm766_vm3, %v730_v52 }
 0x11b   : > { %v572_v55 = vadd.f32 %v1739_v54, %v2249_v63  ;;  %v566_v56 = vpop.f32.mrb[15].mxu0  ;;  %v732_v60 = vsel %vm668_vm14, %v562_v47, %v700_v51 }
 0x11c   : > { %v567_v57 = vadd.f32 %v2249_v63, %v566_v56  ;;  %v731_v58 = vsel %vm667_vm15, %v557_v49, %v699_v53 }
 0x11d   : > { %v702_v59 = vmul.f32 0.01, %v572_v55  ;;  %1798 = vmatprep.mubr.msk.f32.mxu1 %vm766_vm3, %v731_v58  ;;  %vm670_vm0 = vcmp.ge.f32.partialorder %v572_v55, 0.0 }
 0x11e   : > { %vm669_vm1 = vcmp.ge.f32.partialorder %v567_v57, 0.0  ;;  %v701_v61 = vmul.f32 0.01, %v567_v57  ;;  %v1742_v62 = vpop.f32.mrb[16].mxu0  ;;  %1799 = vmatmul.mubr.msk.f32.gmra.mrb[12].mxu1 %vm766_vm3, %v732_v60 }
 0x11f   : > { %v582_v0 = vadd.f32 %v1742_v62, %v2249_v63  ;;  %v576_v1 = vpop.f32.mrb[17].mxu0  ;;  %v734_v5 = vsel %vm670_vm0, %v572_v55, %v702_v59 }
 0x120   : > { %v577_v2 = vadd.f32 %v2249_v63, %v576_v1  ;;  %v733_v3 = vsel %vm669_vm1, %v567_v57, %v701_v61 }
 0x121   : > { %v704_v4 = vmul.f32 0.01, %v582_v0  ;;  %1801 = vmatprep.mubr.msk.f32.mxu1 %vm766_vm3, %v733_v3  ;;  %vm672_vm2 = vcmp.ge.f32.partialorder %v582_v0, 0.0  ;;  %v2022_v3 = vmov 0  }
 0x122   : > { %vm671_vm4 = vcmp.ge.f32.partialorder %v577_v2, 0.0  ;;  %v703_v6 = vmul.f32 0.01, %v577_v2  ;;  %v1745_v7 = vpop.f32.mrb[18].mxu0  ;;  %1802 = vmatmul.mubr.msk.f32.gmra.mrb[14].mxu1 %vm766_vm3, %v734_v5  ;;  %1957 = vset.pattern.permute.xlu0 %v2022_v3 }
 0x123   : > { %v592_v8 = vadd.f32 %v1745_v7, %v2249_v63  ;;  %v586_v9 = vpop.f32.mrb[19].mxu0  ;;  %v736_v13 = vsel %vm672_vm2, %v582_v0, %v704_v4  ;;  %v2325_v4 = vld [vmem:[%s2522_s4] ss:$0 sm:$0xff] }
 0x124   : > { %v587_v10 = vadd.f32 %v2249_v63, %v586_v9  ;;  %v735_v11 = vsel %vm671_vm4, %v577_v2, %v703_v6  ;;  %v2318_v2 = vld [vmem:[%s2523_s5] sm:$0x1] }
 0x125   : > { %vm674_vm5 = vcmp.ge.f32.partialorder %v592_v8, 0.0  ;;  %v706_v12 = vmul.f32 0.01, %v592_v8  ;;  %1804 = vmatprep.mubr.msk.f32.mxu1 %vm766_vm3, %v735_v11 }
 0x126   : > { %vm673_vm6 = vcmp.ge.f32.partialorder %v587_v10, 0.0  ;;  %v705_v14 = vmul.f32 0.01, %v587_v10  ;;  %1805 = vmatmul.mubr.msk.f32.gmra.mrb[16].mxu1 %vm766_vm3, %v736_v13  ;;  %v1748_v15 = vpop.f32.mrb[20].mxu0 }
 0x127   : > { %v602_v16 = vadd.f32 %v1748_v15, %v2249_v63  ;;  %v596_v17 = vpop.f32.mrb[21].mxu0  ;;  %v738_v18 = vsel %vm674_vm5, %v592_v8, %v706_v12 }
 0x128   : > { %v597_v19 = vadd.f32 %v2249_v63, %v596_v17  ;;  %v737_v20 = vsel %vm673_vm6, %v587_v10, %v705_v14 }
 0x129   : > { %vm676_vm7 = vcmp.ge.f32.partialorder %v602_v16, 0.0  ;;  %v708_v21 = vmul.f32 0.01, %v602_v16  ;;  %1807 = vmatprep.mubr.msk.f32.mxu1 %vm766_vm3, %v737_v20 }
 0x12a   : > { %vm675_vm8 = vcmp.ge.f32.partialorder %v597_v19, 0.0  ;;  %v707_v22 = vmul.f32 0.01, %v597_v19  ;;  %1808 = vmatmul.mubr.msk.f32.gmra.mrb[18].mxu1 %vm766_vm3, %v738_v18  ;;  %v1751_v23 = vpop.f32.mrb[22].mxu0 }
 0x12b   : > { %v612_v24 = vadd.f32 %v1751_v23, %v2249_v63  ;;  %v740_v25 = vsel %vm676_vm7, %v602_v16, %v708_v21  ;;  %v606_v26 = vpop.f32.mrb[23].mxu0 }
 0x12c   : > { %v739_v27 = vsel %vm675_vm8, %v597_v19, %v707_v22  ;;  %v607_v28 = vadd.f32 %v2249_v63, %v606_v26 }
 0x12d   : > { %1810 = vmatprep.mubr.msk.f32.mxu1 %vm766_vm3, %v739_v27  ;;  %vm678_vm9 = vcmp.ge.f32.partialorder %v612_v24, 0.0  ;;  %v710_v29 = vmul.f32 0.01, %v612_v24 }
 0x12e   : > { %1811 = vmatmul.mubr.msk.f32.gmra.mrb[20].mxu1 %vm766_vm3, %v740_v25  ;;  %vm677_vm10 = vcmp.ge.f32.partialorder %v607_v28, 0.0  ;;  %v709_v30 = vmul.f32 0.01, %v607_v28  ;;  %v1754_v31 = vpop.f32.mrb[24].mxu0 }
 0x12f   : > { %v622_v32 = vadd.f32 %v1754_v31, %v2249_v63  ;;  %v742_v33 = vsel %vm678_vm9, %v612_v24, %v710_v29  ;;  %v616_v34 = vpop.f32.mrb[25].mxu0 }
 0x130   : > { %v741_v35 = vsel %vm677_vm10, %v607_v28, %v709_v30  ;;  %v617_v36 = vadd.f32 %v2249_v63, %v616_v34 }
 0x131   : > { %1813 = vmatprep.mubr.msk.f32.mxu1 %vm766_vm3, %v741_v35  ;;  %vm680_vm11 = vcmp.ge.f32.partialorder %v622_v32, 0.0  ;;  %v712_v37 = vmul.f32 0.01, %v622_v32 }
 0x132   : > { %1814 = vmatmul.mubr.msk.f32.gmra.mrb[22].mxu1 %vm766_vm3, %v742_v33  ;;  %vm679_vm12 = vcmp.ge.f32.partialorder %v617_v36, 0.0  ;;  %v711_v38 = vmul.f32 0.01, %v617_v36  ;;  %v1757_v39 = vpop.f32.mrb[26].mxu0 }
 0x133   : > { %v632_v40 = vadd.f32 %v1757_v39, %v2249_v63  ;;  %v744_v41 = vsel %vm680_vm11, %v622_v32, %v712_v37  ;;  %v626_v42 = vpop.f32.mrb[27].mxu0 }
 0x134   : > { %v743_v43 = vsel %vm679_vm12, %v617_v36, %v711_v38  ;;  %v627_v44 = vadd.f32 %v2249_v63, %v626_v42 }
 0x135   : > { %1816 = vmatprep.mubr.msk.f32.mxu1 %vm766_vm3, %v743_v43  ;;  %vm682_vm13 = vcmp.ge.f32.partialorder %v632_v40, 0.0  ;;  %v714_v45 = vmul.f32 0.01, %v632_v40 }
 0x136   : > { %1817 = vmatmul.mubr.msk.f32.gmra.mrb[24].mxu1 %vm766_vm3, %v744_v41  ;;  %vm681_vm14 = vcmp.ge.f32.partialorder %v627_v44, 0.0  ;;  %v713_v46 = vmul.f32 0.01, %v627_v44  ;;  %v1760_v47 = vpop.f32.mrb[28].mxu0 }
 0x137   : > { %v642_v48 = vadd.f32 %v1760_v47, %v2249_v63  ;;  %v746_v49 = vsel %vm682_vm13, %v632_v40, %v714_v45  ;;  %v636_v50 = vpop.f32.mrb[29].mxu0 }
 0x138   : > { %v745_v51 = vsel %vm681_vm14, %v627_v44, %v713_v46  ;;  %v637_v52 = vadd.f32 %v2249_v63, %v636_v50 }
 0x139   : > { %1819 = vmatprep.mubr.msk.f32.mxu1 %vm766_vm3, %v745_v51  ;;  %vm684_vm15 = vcmp.ge.f32.partialorder %v642_v48, 0.0  ;;  %v716_v53 = vmul.f32 0.01, %v642_v48 }
 0x13a   : > { %1820 = vmatmul.mubr.msk.f32.gmra.mrb[26].mxu1 %vm766_vm3, %v746_v49  ;;  %vm683_vm0 = vcmp.ge.f32.partialorder %v637_v52, 0.0  ;;  %v715_v54 = vmul.f32 0.01, %v637_v52  ;;  %v1763_v55 = vpop.f32.mrb[30].mxu0 }
 0x13b   : > { %v652_v56 = vadd.f32 %v1763_v55, %v2249_v63  ;;  %v748_v57 = vsel %vm684_vm15, %v642_v48, %v716_v53  ;;  %v646_v58 = vpop.f32.mrb[31].mxu0 }
 0x13c   : > { %v747_v59 = vsel %vm683_vm0, %v637_v52, %v715_v54  ;;  %v647_v60 = vadd.f32 %v2249_v63, %v646_v58  ;;  %v1185_v63 = vld [vmem:[#allocation2] sm:$0x1] }
 0x13d   : > { %1822 = vmatprep.mubr.msk.f32.mxu1 %vm766_vm3, %v747_v59  ;;  %vm686_vm1 = vcmp.ge.f32.partialorder %v652_v56, 0.0  ;;  %v718_v61 = vmul.f32 0.01, %v652_v56  ;;  %1188 = vperm.xlu0 %1957, %v1185_v63  }
 0x13e   : > { %1823 = vmatmul.mubr.msk.f32.gmra.mrb[28].mxu1 %vm766_vm3, %v748_v57  ;;  %vm685_vm2 = vcmp.ge.f32.partialorder %v647_v60, 0.0  ;;  %v717_v62 = vmul.f32 0.01, %v647_v60 }
 0x13f   : > { %v750_v0 = vsel %vm686_vm1, %v652_v56, %v718_v61 }
 0x140   : > { %v749_v1 = vsel %vm685_vm2, %v647_v60, %v717_v62 }
 0x141   : > { %1825 = vmatprep.mubr.msk.f32.mxu1 %vm766_vm3, %v749_v1 }
 0x142   : > { %1826 = vmatmul.mubr.msk.f32.gmra.mrb[30].mxu1 %vm766_vm3, %v750_v0 }
 0x143   : > { %1690 = vmatprep.mubr.msk.f32.mxu1 %vm766_vm3, %v2318_v2 }
 0x1d9   : > { %v1782_v5 = vpop.f32.mrb[0].mxu1 }
 0x1da   : > { %v935_v6 = vadd.f32 %v1782_v5, %v2325_v4  ;;  %v929_v7 = vpop.f32.mrb[1].mxu1 }
 0x1db   : > { %v930_v8 = vadd.f32 %v2325_v4, %v929_v7 }
 0x1dc   : > { %vm1089_vm4 = vcmp.ge.f32.partialorder %v935_v6, 0.0  ;;  %v1121_v9 = vmul.f32 0.01, %v935_v6 }
 0x1dd   : > { %vm1088_vm5 = vcmp.ge.f32.partialorder %v930_v8, 0.0  ;;  %v1120_v10 = vmul.f32 0.01, %v930_v8  ;;  %v1785_v11 = vpop.f32.mrb[2].mxu1 }
 0x1de   : > { %v2329_v12 = vsel %vm1089_vm4, %v935_v6, %v1121_v9  ;;  %v945_v13 = vadd.f32 %v1785_v11, %v2325_v4  ;;  %v939_v14 = vpop.f32.mrb[3].mxu1 }
 0x1df   : > { %v2332_v15 = vsel %vm1088_vm5, %v930_v8, %v1120_v10  ;;  %v940_v16 = vadd.f32 %v2325_v4, %v939_v14 }
 0x1e0   : > { %v1871_v17 = vpack.c.bf16 %v2329_v12, %v2332_v15  ;;  %vm1091_vm6 = vcmp.ge.f32.partialorder %v945_v13, 0.0  ;;  %v1123_v18 = vmul.f32 0.01, %v945_v13 }
 0x1e1   : > { %vm1090_vm7 = vcmp.ge.f32.partialorder %v940_v16, 0.0  ;;  %v1122_v19 = vmul.f32 0.01, %v940_v16  ;;  %v1788_v20 = vpop.f32.mrb[4].mxu1 }
 0x1e2   : > { %v2337_v21 = vsel %vm1091_vm6, %v945_v13, %v1123_v18  ;;  %v955_v22 = vadd.f32 %v1788_v20, %v2325_v4  ;;  %v949_v23 = vpop.f32.mrb[5].mxu1 }
 0x1e3   : > { %v2340_v24 = vsel %vm1090_vm7, %v940_v16, %v1122_v19  ;;  %v950_v25 = vadd.f32 %v2325_v4, %v949_v23  ;;  %vm2397_vm7 = vmpackc.low %vm766_vm3, %vm766_vm3 }
 0x1e4   : > { %v1877_v26 = vpack.c.bf16 %v2337_v21, %v2340_v24  ;;  %vm1093_vm8 = vcmp.ge.f32.partialorder %v955_v22, 0.0  ;;  %v1125_v27 = vmul.f32 0.01, %v955_v22 }
 0x1e5   : > { %vm1092_vm9 = vcmp.ge.f32.partialorder %v950_v25, 0.0  ;;  %v1124_v28 = vmul.f32 0.01, %v950_v25  ;;  %v1791_v29 = vpop.f32.mrb[6].mxu1 }
 0x1e6   : > { %v2345_v30 = vsel %vm1093_vm8, %v955_v22, %v1125_v27  ;;  %v965_v31 = vadd.f32 %v1791_v29, %v2325_v4  ;;  %v959_v32 = vpop.f32.mrb[7].mxu1 }
 0x1e7   : > { %v2348_v33 = vsel %vm1092_vm9, %v950_v25, %v1124_v28  ;;  %v960_v34 = vadd.f32 %v2325_v4, %v959_v32 }
 0x1e8   : > { %v1883_v35 = vpack.c.bf16 %v2345_v30, %v2348_v33  ;;  %vm1095_vm10 = vcmp.ge.f32.partialorder %v965_v31, 0.0  ;;  %v1127_v36 = vmul.f32 0.01, %v965_v31 }
 0x1e9   : > { %vm1094_vm11 = vcmp.ge.f32.partialorder %v960_v34, 0.0  ;;  %v1126_v37 = vmul.f32 0.01, %v960_v34  ;;  %v1794_v38 = vpop.f32.mrb[8].mxu1 }
 0x1ea   : > { %v2353_v39 = vsel %vm1095_vm10, %v965_v31, %v1127_v36  ;;  %v975_v40 = vadd.f32 %v1794_v38, %v2325_v4  ;;  %v969_v41 = vpop.f32.mrb[9].mxu1 }
 0x1eb   : > { %v2356_v42 = vsel %vm1094_vm11, %v960_v34, %v1126_v37  ;;  %v970_v43 = vadd.f32 %v2325_v4, %v969_v41 }
 0x1ec   : > { %v1889_v44 = vpack.c.bf16 %v2353_v39, %v2356_v42  ;;  %vm1097_vm12 = vcmp.ge.f32.partialorder %v975_v40, 0.0  ;;  %v1129_v45 = vmul.f32 0.01, %v975_v40 }
 0x1ed   : > { %vm1096_vm13 = vcmp.ge.f32.partialorder %v970_v43, 0.0  ;;  %v1128_v46 = vmul.f32 0.01, %v970_v43  ;;  %v1797_v47 = vpop.f32.mrb[10].mxu1 }
 0x1ee   : > { %v2361_v48 = vsel %vm1097_vm12, %v975_v40, %v1129_v45  ;;  %v985_v49 = vadd.f32 %v1797_v47, %v2325_v4  ;;  %v979_v50 = vpop.f32.mrb[11].mxu1 }
 0x1ef   : > { %v2364_v51 = vsel %vm1096_vm13, %v970_v43, %v1128_v46  ;;  %v980_v52 = vadd.f32 %v2325_v4, %v979_v50 }
 0x1f0   : > { %v1895_v53 = vpack.c.bf16 %v2361_v48, %v2364_v51  ;;  %vm1099_vm14 = vcmp.ge.f32.partialorder %v985_v49, 0.0  ;;  %v1131_v54 = vmul.f32 0.01, %v985_v49  ;;  %v2023_v48 = vmov 1966171168  }
 0x1f1   : > { %vm1098_vm15 = vcmp.ge.f32.partialorder %v980_v52, 0.0  ;;  %v1130_v55 = vmul.f32 0.01, %v980_v52  ;;  %v1800_v56 = vpop.f32.mrb[12].mxu1  ;;  %v1369_v51 = vunpack.c.l.s4 %v2023_v48 }
 0x1f2   : > { %v2369_v57 = vsel %vm1099_vm14, %v985_v49, %v1131_v54  ;;  %v995_v58 = vadd.f32 %v1800_v56, %v2325_v4  ;;  %v989_v59 = vpop.f32.mrb[13].mxu1 }
 0x1f3   : > { %v2372_v60 = vsel %vm1098_vm15, %v980_v52, %v1130_v55  ;;  %v990_v61 = vadd.f32 %v2325_v4, %v989_v59 }
 0x1f4   : > { %v1901_v62 = vpack.c.bf16 %v2369_v57, %v2372_v60  ;;  %vm1101_vm0 = vcmp.ge.f32.partialorder %v995_v58, 0.0  ;;  %v1133_v0 = vmul.f32 0.01, %v995_v58  ;;  %v1370_v57 = vunpack.c.0.s8 %v1369_v51 }
 0x1f5   : > { %vm1100_vm1 = vcmp.ge.f32.partialorder %v990_v61, 0.0  ;;  %v1132_v1 = vmul.f32 0.01, %v990_v61  ;;  %v1803_v63 = vpop.f32.mrb[14].mxu1 }
 0x1f6   : > { %v2377_v3 = vsel %vm1101_vm0, %v995_v58, %v1133_v0  ;;  %v1005_v5 = vadd.f32 %v1803_v63, %v2325_v4  ;;  %v999_v6 = vpop.f32.mrb[15].mxu1 }
 0x1f7   : > { %v2380_v7 = vsel %vm1100_vm1, %v990_v61, %v1132_v1  ;;  %v1000_v8 = vadd.f32 %v2325_v4, %v999_v6 }
 0x1f8   : > { %v1907_v9 = vpack.c.bf16 %v2377_v3, %v2380_v7  ;;  %vm1103_vm2 = vcmp.ge.f32.partialorder %v1005_v5, 0.0  ;;  %v1135_v10 = vmul.f32 0.01, %v1005_v5 }
 0x1f9   : > { %vm1102_vm4 = vcmp.ge.f32.partialorder %v1000_v8, 0.0  ;;  %v1134_v11 = vmul.f32 0.01, %v1000_v8  ;;  %v1806_v13 = vpop.f32.mrb[16].mxu1 }
 0x1fa   : > { %v2385_v14 = vsel %vm1103_vm2, %v1005_v5, %v1135_v10  ;;  %v1015_v16 = vadd.f32 %v1806_v13, %v2325_v4  ;;  %v1009_v18 = vpop.f32.mrb[17].mxu1 }
 0x1fb   : > { %v2388_v19 = vsel %vm1102_vm4, %v1000_v8, %v1134_v11  ;;  %v1010_v20 = vadd.f32 %v2325_v4, %v1009_v18 }
 0x1fc   : > { %v1913_v22 = vpack.c.bf16 %v2385_v14, %v2388_v19  ;;  %vm1105_vm5 = vcmp.ge.f32.partialorder %v1015_v16, 0.0  ;;  %v1137_v23 = vmul.f32 0.01, %v1015_v16 }
 0x1fd   : > { %vm1104_vm6 = vcmp.ge.f32.partialorder %v1010_v20, 0.0  ;;  %v1136_v25 = vmul.f32 0.01, %v1010_v20  ;;  %v1809_v27 = vpop.f32.mrb[18].mxu1 }
 0x1fe   : > { %v1169_v28 = vsel %vm1105_vm5, %v1015_v16, %v1137_v23  ;;  %v1025_v29 = vadd.f32 %v1809_v27, %v2325_v4  ;;  %v1019_v31 = vpop.f32.mrb[19].mxu1 }
 0x1ff   : > { %v1168_v32 = vsel %vm1104_vm6, %v1010_v20, %v1136_v25  ;;  %v1020_v34 = vadd.f32 %v2325_v4, %v1019_v31 }
 0x200   : > { %v1868_v37 = vpack.c.bf16 %v1169_v28, %v1168_v32  ;;  %vm1107_vm8 = vcmp.ge.f32.partialorder %v1025_v29, 0.0  ;;  %v1139_v38 = vmul.f32 0.01, %v1025_v29 }
 0x201   : > { %vm1106_vm9 = vcmp.ge.f32.partialorder %v1020_v34, 0.0  ;;  %v1138_v40 = vmul.f32 0.01, %v1020_v34  ;;  %v1812_v41 = vpop.f32.mrb[20].mxu1 }
 0x202   : > { %v1171_v43 = vsel %vm1107_vm8, %v1025_v29, %v1139_v38  ;;  %v1035_v45 = vadd.f32 %v1812_v41, %v2325_v4  ;;  %1870 = vmatprep.subr.msk.bf16.mxu1 %vm2397_vm7, %v1868_v37  ;;  %v1029_v46 = vpop.f32.mrb[21].mxu1 }
 0x203   : > { %v1170_v47 = vsel %vm1106_vm9, %v1020_v34, %v1138_v40  ;;  %v1030_v49 = vadd.f32 %v2325_v4, %v1029_v46  ;;  %1873 = vmatpush3.bf16.xpose.msk.msra.mxu1 %vm2397_vm7, %v1871_v17 }
 0x204   : > { %v1874_v50 = vpack.c.bf16 %v1171_v43, %v1170_v47  ;;  %vm1109_vm10 = vcmp.ge.f32.partialorder %v1035_v45, 0.0  ;;  %v1141_v52 = vmul.f32 0.01, %v1035_v45 }
 0x205   : > { %vm1108_vm11 = vcmp.ge.f32.partialorder %v1030_v49, 0.0  ;;  %v1140_v54 = vmul.f32 0.01, %v1030_v49  ;;  %v1815_v55 = vpop.f32.mrb[22].mxu1 }
 0x206   : > { %v1173_v56 = vsel %vm1109_vm10, %v1035_v45, %v1141_v52  ;;  %1876 = vmatprep.subr.msk.bf16.mxu1 %vm2397_vm7, %v1874_v50  ;;  %v1045_v58 = vadd.f32 %v1815_v55, %v2325_v4  ;;  %v1039_v59 = vpop.f32.mrb[23].mxu1 }
 0x207   : > { %v1172_v61 = vsel %vm1108_vm11, %v1030_v49, %v1140_v54  ;;  %v1040_v0 = vadd.f32 %v2325_v4, %v1039_v59 }
 0x208   : > { %v1880_v12 = vpack.c.bf16 %v1173_v56, %v1172_v61  ;;  %vm1111_vm12 = vcmp.ge.f32.partialorder %v1045_v58, 0.0  ;;  %v1143_v15 = vmul.f32 0.01, %v1045_v58 }
 0x209   : > { %vm1110_vm13 = vcmp.ge.f32.partialorder %v1040_v0, 0.0  ;;  %v1142_v17 = vmul.f32 0.01, %v1040_v0  ;;  %v1818_v1 = vpop.f32.mrb[24].mxu1 }
 0x20a   : > { %v1175_v63 = vsel %vm1111_vm12, %v1045_v58, %v1143_v15  ;;  %v1055_v5 = vadd.f32 %v1818_v1, %v2325_v4  ;;  %v1049_v6 = vpop.f32.mrb[25].mxu1 }
 0x20b   : > { %v1174_v8 = vsel %vm1110_vm13, %v1040_v0, %v1142_v17  ;;  %1879 = vmatpush3.bf16.xpose.msk.msra.mxu1 %vm2397_vm7, %v1877_v26  ;;  %v1050_v10 = vadd.f32 %v2325_v4, %v1049_v6 }
 0x20c   : > { %v1886_v11 = vpack.c.bf16 %v1175_v63, %v1174_v8  ;;  %1882 = vmatprep.subr.msk.bf16.mxu1 %vm2397_vm7, %v1880_v12  ;;  %vm1113_vm14 = vcmp.ge.f32.partialorder %v1055_v5, 0.0  ;;  %v1145_v13 = vmul.f32 0.01, %v1055_v5 }
 0x20d   : > { %vm1112_vm15 = vcmp.ge.f32.partialorder %v1050_v10, 0.0  ;;  %v1144_v16 = vmul.f32 0.01, %v1050_v10  ;;  %v1821_v18 = vpop.f32.mrb[26].mxu1 }
 0x20e   : > { %v1177_v20 = vsel %vm1113_vm14, %v1055_v5, %v1145_v13  ;;  %v1065_v23 = vadd.f32 %v1821_v18, %v2325_v4  ;;  %v1059_v25 = vpop.f32.mrb[27].mxu1 }
 0x20f   : > { %v1176_v27 = vsel %vm1112_vm15, %v1050_v10, %v1144_v16  ;;  %v1060_v21 = vadd.f32 %v2325_v4, %v1059_v25 }
 0x210   : > { %v1892_v24 = vpack.c.bf16 %v1177_v20, %v1176_v27  ;;  %vm1115_vm0 = vcmp.ge.f32.partialorder %v1065_v23, 0.0  ;;  %v1147_v26 = vmul.f32 0.01, %v1065_v23 }
 0x211   : > { %vm1114_vm1 = vcmp.ge.f32.partialorder %v1060_v21, 0.0  ;;  %v1146_v28 = vmul.f32 0.01, %v1060_v21  ;;  %v1824_v29 = vpop.f32.mrb[28].mxu1 }
 0x212   : > { %v1179_v31 = vsel %vm1115_vm0, %v1065_v23, %v1147_v26  ;;  %v1075_v32 = vadd.f32 %v1824_v29, %v2325_v4  ;;  %v1069_v34 = vpop.f32.mrb[29].mxu1 }
 0x213   : > { %1885 = vmatpush3.bf16.xpose.msk.msra.mxu1 %vm2397_vm7, %v1883_v35  ;;  %v1178_v37 = vsel %vm1114_vm1, %v1060_v21, %v1146_v28  ;;  %v1070_v38 = vadd.f32 %v2325_v4, %v1069_v34 }
 0x214   : > { %1888 = vmatprep.subr.msk.bf16.mxu1 %vm2397_vm7, %v1886_v11  ;;  %v1898_v40 = vpack.c.bf16 %v1179_v31, %v1178_v37  ;;  %vm1117_vm2 = vcmp.ge.f32.partialorder %v1075_v32, 0.0  ;;  %v1149_v41 = vmul.f32 0.01, %v1075_v32 }
 0x215   : > { %vm1116_vm4 = vcmp.ge.f32.partialorder %v1070_v38, 0.0  ;;  %v1148_v43 = vmul.f32 0.01, %v1070_v38  ;;  %v1827_v45 = vpop.f32.mrb[30].mxu1 }
 0x216   : > { %v1181_v46 = vsel %vm1117_vm2, %v1075_v32, %v1149_v41  ;;  %v1085_v47 = vadd.f32 %v1827_v45, %v2325_v4  ;;  %v1079_v49 = vpop.f32.mrb[31].mxu1 }
 0x217   : > { %v1180_v30 = vsel %vm1116_vm4, %v1070_v38, %v1148_v43  ;;  %v1080_v33 = vadd.f32 %v2325_v4, %v1079_v49  ;;  %v1191_v4 = vlaneseq }
 0x218   : > { %v1904_v35 = vpack.c.bf16 %v1181_v46, %v1180_v30  ;;  %vm1119_vm5 = vcmp.ge.f32.partialorder %v1085_v47, 0.0  ;;  %v1151_v50 = vmul.f32 0.01, %v1085_v47 }
 0x219   : > { %vm1118_vm6 = vcmp.ge.f32.partialorder %v1080_v33, 0.0  ;;  %v1150_v52 = vmul.f32 0.01, %v1080_v33  ;;  %v1192_v39 = vshrl.u32 %v1191_v4, 7 }
 0x21a   : > { %v1183_v54 = vsel %vm1119_vm5, %v1085_v47, %v1151_v50 }
 0x21b   : > { %1891 = vmatpush3.bf16.xpose.msk.msra.mxu1 %vm2397_vm7, %v1889_v44  ;;  %v1182_v55 = vsel %vm1118_vm6, %v1080_v33, %v1150_v52  ;;  %v1193_v42 = vsub.s32 0, %v1192_v39  ;;  %v1189_v44 = vpop.permute.xlu0 %1188 }
 0x21c   : > { %1894 = vmatprep.subr.msk.bf16.mxu1 %vm2397_vm7, %v1892_v24  ;;  %v1910_v56 = vpack.c.bf16 %v1183_v54, %v1182_v55 }
 0x223   : > { %1897 = vmatpush3.bf16.xpose.msk.msra.mxu1 %vm2397_vm7, %v1895_v53  ;;  %v1194_v53 = vrot.slane %v1189_v44, %v1193_v42 }
 0x224   : > { %1900 = vmatprep.subr.msk.bf16.mxu1 %vm2397_vm7, %v1898_v40 }
 0x22b   : > { %1903 = vmatpush3.bf16.xpose.msk.msra.mxu1 %vm2397_vm7, %v1901_v62 }
 0x22c   : > { %1906 = vmatprep.subr.msk.bf16.mxu1 %vm2397_vm7, %v1904_v35 }
 0x233   : > { %1909 = vmatpush3.bf16.xpose.msk.msra.mxu1 %vm2397_vm7, %v1907_v9  ;;  %v1373_v9 = vsub.s32 %v1370_v57, %v1192_v39 }
 0x234   : > { %1912 = vmatprep.subr.msk.bf16.mxu1 %vm2397_vm7, %v1910_v56 }
 0x23b   : > { %1915 = vmatpush3.bf16.xpose.msk.msra.mxu1 %vm2397_vm7, %v1913_v22 }
 0x242   : > { %1691 = vmatmul.mubr.msk.f32.vlgmr.msra.gmra.mrb[32].mxu1 %vm766_vm3, %v2318_v2  ;;  %vm1385_vm3 = vcmp.lt.s32.totalorder %v1191_v4, 256 }
 0x315   : > { %v1360_v60 = vpop.f32.mrb[32].mxu1 }
 0x316   : > { %v1361_v62 = vadd.f32 %v1360_v60, %v1194_v53  ;;  %v1362_v3 = vpop.f32.mrb[33].mxu1 }
 0x317   : > { %v1363_v7 = vadd.f32 %v1362_v3, %v1194_v53 }
 0x319   : > { %v1367_v14 = vcombine.low %v1361_v62, %v1363_v7 }
 0x31b   : > { %v1374_v2 = vrot.slane %v1367_v14, %v1373_v9 }
 0x31d   : > { %v1381_v19 = vrot.slane %v1374_v2, %v1373_v9 }
 0x31f   : > { %1387 = vst.msk [vmem:[%s274_s23] sm:$0x3] %vm1385_vm3, %v1381_v19 }
 0x320   : > { %1971 = shalt.err (!%p1968_p3)
}
 0x321   : > { %s1972_s20 = scalar_lea.hbm %s2476_s9, 32  ;;  %s1976_s19 = scalar_lea.hbm %s2525_s7, 64 }
 0x322   : > { %p1973_p4 = scmp.ne.s32.totalorder %s2476_s9, %s1972_s20  ;;  %p1977_p9 = scmp.lt.u32.totalorder %s2476_s9, %s2525_s7 }
 0x323   : > { %p1978_p10 = scmp.lt.u32.totalorder %s1976_s19, %s1972_s20  ;;  %p1980_p12 = scmp.lt.u32.totalorder %s1972_s20, %s2476_s9 }
 0x324   : > { %p1974_p7 = pnand %p1973_p4, %p2103_p5 }
 0x325   : > { %p1979_p11 = por %p1978_p10, %p1977_p9 }
 0x326   : > { %p1975_p8 = pneg %p1974_p7 }
 0x327   : > { %p1981_p13 = por %p1980_p12, %p1979_p11 }
 0x329   : > { %p1982_p0 = pnand %p1981_p13, %p1975_p8 }
 0x32b   : > { %1985 = shalt.err (!%p1982_p0)
}
 0x32c   : > { %1916 = dma.vmem_to_hbm [thread:$0]  (%p2103_p5), %s2478_s24, 32, %s2476_s9, %s1389_s6  }
 0x32d PF: > { %p1922_p1 = scmp.ge.s32.totalorder %s2020_s29, 2  ;;  %s1415_s23 = sand.u32 1, %s2008_s26  }
 0x32e   : > { %s1416_s25 = scalar_lea.sflag [#allocation4], %s1415_s23 }
 0x32f   : > { %p1919_p2 = pnand %p1922_p1, %p2107_p6 }
 0x331   : > { %2003 = dma.done.wait (!%p1919_p2), %s1416_s25, 32  }
 0x332   : > { %2005 = vsyncadd (!%p1919_p2), %s1416_s25, 4294967264  ;;  %p19_p3 = scmp.ge.s32.totalorder %s2091_s8, 4   ;;  %s2530_s26 = smov %s2012_s27 }
 0x333   : > { %s2531_s27 = smov %s2016_s28  ;;  %s2532_s28 = smov %s2101_s11 }
 0x334   : > { %s2533_s29 = smov %s2091_s8  ;;  %21 = sbr.rel (!%p19_p3) target bundleno = 6 (0x6), region = 83 }
 0x33b   :  { %1421 = vsyncpa [#allocation4], 1 }
 0x33c   :  { %1423 = vsyncpa [#allocation4 + $0x1], 1 }

</bundles_post_ra>
